<compile_context>
chip_gen: v5e
topology: v5e:2x2
jax: 0.10.0
libtpu: 0.0.40
codegen_flags: <defaults>
</compile_context>

<pallas_src>
import functools

import jax
import jax.numpy as jnp
from jax.experimental import pallas as pl
from jax.experimental.pallas import tpu as pltpu


def _conv2x2_kernel(x_ref, w_ref, b_ref, o_ref, *, img_w):
    # x_ref : (N, H*W) VMEM -- each sublane row is one flattened image.
    # w_ref : (4,)     SMEM -- [w00, w01, w10, w11]
    # b_ref : (1,)     SMEM -- bias
    # o_ref : (N, H*W) VMEM -- padded conv output; only positions j with
    #         (j % W) < W-1 and (j // W) < H-1 are valid, wrapper drops the rest.
    x = x_ref[...]
    hw = x.shape[1]

    w00 = w_ref[0]
    w01 = w_ref[1]
    w10 = w_ref[2]
    w11 = w_ref[3]
    b = b_ref[0]

    # Lane rolls (XLU slot, overlap with VPU FMAs).  With roll semantics
    # out[j] = x[(j - shift) mod hw]:
    #   shift = hw-1       -> x[j+1]       (right neighbor)
    #   shift = hw-W       -> x[j+W]       (down neighbor)
    #   shift = hw-W-1     -> x[j+W+1]     (down-right neighbor)
    # Wrap-around only pollutes each image's last column / last row, which the
    # wrapper discards before the flatten.
    x_r = pltpu.roll(x, shift=hw - 1, axis=1)
    x_d = pltpu.roll(x, shift=hw - img_w, axis=1)
    x_dr = pltpu.roll(x, shift=hw - img_w - 1, axis=1)

    out = w00 * x + w01 * x_r + w10 * x_d + w11 * x_dr + b
    o_ref[...] = out.astype(o_ref.dtype)


def mymodel2_forward(x, weight, bias):
    """x: (N, 1, H, W) float32 (NCHW, like PyTorch)
       weight: (1, 1, 2, 2) float32, bias: (1,) float32
       returns: (N, (H-1)*(W-1)) float32  == flatten(conv2d(x), 1)"""
    n, c, h, w = x.shape
    assert c == 1, "MyModel2 conv has in_channels=1"

    # Lane-dense layout: one flattened image per sublane row.
    x2 = x.reshape(n, h * w)
    w_flat = weight.reshape(4)

    kernel = functools.partial(_conv2x2_kernel, img_w=w)

    out = pl.pallas_call(
        kernel,
        out_shape=jax.ShapeDtypeStruct((n, h * w), x.dtype),
        in_specs=[
            pl.BlockSpec(memory_space=pltpu.VMEM),
            pl.BlockSpec(memory_space=pltpu.SMEM),
            pl.BlockSpec(memory_space=pltpu.SMEM),
        ],
        out_specs=pl.BlockSpec(memory_space=pltpu.VMEM),
    )(x2, w_flat, bias)

    # Drop the garbage last column and each image's last row, then flatten
    # exactly like torch.flatten(conv_out, 1).
    # TODO(synk): fuse this crop into the kernel store at production sizes.
    out = out.reshape(n, h, w)[:, :h - 1, :w - 1]
    return out.reshape(n, (h - 1) * (w - 1))


if __name__ == "__main__":
    key = jax.random.PRNGKey(0)
    kx, kw, kb = jax.random.split(key, 3)

    # Small shapes consistent with the module: batch=2, 1 channel, 16x16.
    N, C, H, W = 2, 1, 16, 16
    x = jax.random.normal(kx, (N, C, H, W), dtype=jnp.float32)

    # Deterministic parameter init (same shapes as nn.Conv2d(1, 1, (2, 2))).
    weight = jax.random.normal(kw, (1, 1, 2, 2), dtype=jnp.float32) * 0.5
    bias = jax.random.normal(kb, (1,), dtype=jnp.float32) * 0.1

    y = mymodel2_forward(x, weight, bias)
    jax.block_until_ready(y)

    # Correctness check against a pure-JAX reference.
    ref = jax.lax.conv_general_dilated(
        x, weight, window_strides=(1, 1), padding="VALID",
        dimension_numbers=("NCHW", "OIHW", "NCHW")) + bias.reshape(1, 1, 1, 1)
    ref = ref.reshape(N, (H - 1) * (W - 1))
    assert y.shape == (N, (H - 1) * (W - 1))
    assert jnp.allclose(y, ref, atol=1e-5, rtol=1e-5)

    print("KERNEL_OK")
</pallas_src>

<mosaic_0001>
module attributes {stable_mosaic.version = 11 : i64} {
  func.func @_conv2x2_kernel(%arg0: memref<2x256xf32, #tpu.memory_space<vmem>>, %arg1: memref<4xf32, #tpu.memory_space<smem>>, %arg2: memref<1xf32, #tpu.memory_space<smem>>, %arg3: memref<2x256xf32, #tpu.memory_space<vmem>>) attributes {dimension_semantics = [], scalar_prefetch = 0 : i64, scratch_operands = 0 : i64, tpu.core_type = #tpu.core_type<tc>} {
    %c0 = arith.constant 0 : index
    %c0_0 = arith.constant 0 : index
    %0 = vector.load %arg0[%c0, %c0_0] : memref<2x256xf32, #tpu.memory_space<vmem>>, vector<2x256xf32>
    %c0_1 = arith.constant 0 : index
    %1 = memref.load %arg1[%c0_1] : memref<4xf32, #tpu.memory_space<smem>>
    %c1 = arith.constant 1 : index
    %2 = memref.load %arg1[%c1] : memref<4xf32, #tpu.memory_space<smem>>
    %c2 = arith.constant 2 : index
    %3 = memref.load %arg1[%c2] : memref<4xf32, #tpu.memory_space<smem>>
    %c3 = arith.constant 3 : index
    %4 = memref.load %arg1[%c3] : memref<4xf32, #tpu.memory_space<smem>>
    %c0_2 = arith.constant 0 : index
    %5 = memref.load %arg2[%c0_2] : memref<1xf32, #tpu.memory_space<smem>>
    %c255_i32 = arith.constant 255 : i32
    %6 = tpu.dynamic_rotate %0 by %c255_i32 dim 1 : vector<2x256xf32>, i32 -> vector<2x256xf32>
    %c240_i32 = arith.constant 240 : i32
    %7 = tpu.dynamic_rotate %0 by %c240_i32 dim 1 : vector<2x256xf32>, i32 -> vector<2x256xf32>
    %c239_i32 = arith.constant 239 : i32
    %8 = tpu.dynamic_rotate %0 by %c239_i32 dim 1 : vector<2x256xf32>, i32 -> vector<2x256xf32>
    %9 = vector.broadcast %1 : f32 to vector<2x256xf32>
    %10 = arith.mulf %9, %0 : vector<2x256xf32>
    %11 = vector.broadcast %2 : f32 to vector<2x256xf32>
    %12 = arith.mulf %11, %6 : vector<2x256xf32>
    %13 = arith.addf %10, %12 : vector<2x256xf32>
    %14 = vector.broadcast %3 : f32 to vector<2x256xf32>
    %15 = arith.mulf %14, %7 : vector<2x256xf32>
    %16 = arith.addf %13, %15 : vector<2x256xf32>
    %17 = vector.broadcast %4 : f32 to vector<2x256xf32>
    %18 = arith.mulf %17, %8 : vector<2x256xf32>
    %19 = arith.addf %16, %18 : vector<2x256xf32>
    %20 = vector.broadcast %5 : f32 to vector<2x256xf32>
    %21 = arith.addf %19, %20 : vector<2x256xf32>
    %c0_3 = arith.constant 0 : index
    %c0_4 = arith.constant 0 : index
    %22 = vector.load %arg3[%c0_3, %c0_4] : memref<2x256xf32, #tpu.memory_space<vmem>>, vector<2x256xf32>
    tpu.vector_store %arg3[%c0_3, %c0_4], %21 {strides = array<i32>} : memref<2x256xf32, #tpu.memory_space<vmem>>, vector<2x256xf32>,
    return
  }
}

</mosaic_0001>

<bundles_post_ra>
// kernel: tpu_custom_call.1
= control target key start
LH: loop header
LB: loop body
LE: loop exit
PB: predicated region body
PF: predicated region fallthrough
CT: control target
= control target key end

     0   :  { %9 = vsyncpa [#allocation4], 0  ;;  %s255_s0 = inlined_call_operand.hbm [shape: f32[2,256], index: 0, kind: input, shape index: {}]   ;;  %s256_s1 = inlined_call_operand.vmem [shape: f32[4], index: 1, kind: input, shape index: {}]   ;;  %s257_s2 = inlined_call_operand.<no memory space> [shape: f32[1], index: 2, kind: input, shape index: {}]   ;;  %s258_s3 = inlined_call_operand.hbm [shape: f32[2,256], index: 3, kind: output, shape index: {}]  }
   0x1   :  { %10 = vsyncpa [#allocation6], 0 }
   0x2   :  { %11 = vsyncpa [#allocation5], 0  ;;  %s17_s14 = sshll.u32 %s255_s0, 4  ;;  %s214_s15 = smov [#allocation3]   ;;  %s18_s14 = int_to_ptr.hbm [resolvable:$true] %s17_s14 }
   0x3   :  { %s19_s16 = sshll.u32 %s214_s15, 4  ;;  %s28_s19 = sshll.u32 %s256_s1, 4  ;;  %s20_s16 = int_to_ptr.vmem [resolvable:$true] %s19_s16  ;;  %s29_s19 = int_to_ptr.vmem [resolvable:$true] %s28_s19 }
   0x4   :  { %22 = dma.hbm_to_vmem [thread:$0]  %s18_s14, 64, %s20_s16, [#allocation4]  }
   0x5   :  { %s215_s20 = smov [#allocation7]  }
   0x6   :  { %31 = dma.vmem_to_smem %s29_s19, 16, %s215_s20, [#allocation6]  }
   0x7   :  { %208 = dma.done.wait [#allocation4], 64  }
   0x8   :  { %209 = vsyncadd [#allocation4], 4294967232 }
   0x9   :  { %210 = dma.done.wait [#allocation6], 16  }
   0xa   :  { %211 = vsyncadd [#allocation6], 4294967280 }
   0xb   :  { %42 = sfence }
   0xc   :  { %v43_v0 = vld [vmem:[#allocation3] sm:$0xf]  ;;  %s216_s0 = smov 127   ;;  %s217_s1 = smov 112   ;;  %v59_v7 = vlaneseq  ;;  %vm96_vm3 = vcmask 1041408   ;;  %v118_v40 = vstv %s257_s2 }
   0xd   :  { %50 = vst [vmem:[#allocation1] ss:$4 sm:$0xff] %v43_v0  ;;  %s218_s21 = smov 111   ;;  %s139_s22 = sld [smem:[#allocation7 + $0x1]] }
   0xe   :  { %v60_v10 = vand.u32 127, %v59_v7  ;;  %s141_s23 = sld [smem:[#allocation7 + $0x3]]  ;;  %s219_s28 = smov [#allocation8]  }
   0xf   :  { %s44_s24 = sld [smem:[#allocation7]]  ;;  %s126_s29 = sshll.u32 %s219_s28, 4  ;;  %s127_s29 = int_to_ptr.vmem [resolvable:$true] %s126_s29 }
  0x10   :  { %vm61_vm0 = vcmp.lt.s32.totalorder %v60_v10, 127  ;;  %s140_s25 = sld [smem:[#allocation7 + $0x2]]  ;;  %vm85_vm1 = vcmp.lt.s32.totalorder %v60_v10, 111  ;;  %vm73_vm2 = vcmp.lt.s32.totalorder %v60_v10, 112  ;;  %s128_s5 = sshll.u32 %s258_s3, 4  ;;  %s129_s5 = int_to_ptr.hbm [resolvable:$true] %s128_s5 }
  0x13   :  { %v90_v11 = vstv %s139_s22 }
  0x14   :  { %v51_v1 = vld.sshfl [vmem:[#allocation1] sm:$0xff pattern:$0x73625140]  ;;  %v52_v2 = vld.sshfl [vmem:[#allocation1 + $0x8] sm:$0xff pattern:$0x73625140]  ;;  %v109_v18 = vstv %s141_s23 }
  0x15   :  { %55 = vrot.lane.b32.xlu0 %v51_v1, %s216_s0  ;;  %64 = vst [vmem:[#allocation1] ss:$4 sm:$0xff] %v43_v0  ;;  %v88_v21 = vstv %s44_s24 }
  0x16   :  { %v100_v22 = vstv %s140_s25  ;;  %v89_v29 = vmul.f32 %v88_v21, %v43_v0 }
  0x1c   :  { %v65_v3 = vld.sshfl [vmem:[#allocation1] sm:$0xff pattern:$0x73625140]  ;;  %v66_v4 = vld.sshfl [vmem:[#allocation1 + $0x8] sm:$0xff pattern:$0x73625140] }
  0x1d   :  { %57 = vrot.lane.b32.xlu0 %v52_v2, %s216_s0  ;;  %69 = vrot.lane.b32.xlu1 %v65_v3, %s217_s1  ;;  %76 = vst [vmem:[#allocation1] ss:$4 sm:$0xff] %v43_v0 }
  0x24   :  { %v77_v5 = vld.sshfl [vmem:[#allocation1] sm:$0xff pattern:$0x73625140]  ;;  %v78_v6 = vld.sshfl [vmem:[#allocation1 + $0x8] sm:$0xff pattern:$0x73625140] }
  0x25   :  { %71 = vrot.lane.b32.xlu1 %v66_v4, %s217_s1  ;;  %81 = vrot.lane.b32.xlu2 %v77_v5, %s218_s21 }
  0x2d   :  { %83 = vrot.lane.b32.xlu2 %v78_v6, %s218_s21 }
  0x7f   :  { %v82_v9 = vpop.permute.xlu2 %81 }
  0x87   :  { %v56_v8 = vpop.permute.xlu0 %55  ;;  %v84_v16 = vpop.permute.xlu2 %83 }
  0x88   :  { %v87_v19 = vsel %vm85_vm1, %v84_v16, %v82_v9  ;;  %v86_v26 = vsel %vm85_vm1, %v82_v9, %v84_v16 }
  0x89   :  { %v111_v24 = vmul.f32 %v109_v18, %v87_v19  ;;  %v110_v32 = vmul.f32 %v109_v18, %v86_v26 }
  0x8b   :  { %v114_v33 = vrot.slane %v111_v24, 6 }
  0x8d   :  { %v115_v39 = vsel %vm96_vm3, %v110_v32, %v114_v33 }
  0x8f   :  { %v58_v12 = vpop.permute.xlu0 %57  ;;  %v70_v13 = vpop.permute.xlu1 %69 }
  0x90   :  { %v63_v14 = vsel %vm61_vm0, %v58_v12, %v56_v8  ;;  %v62_v17 = vsel %vm61_vm0, %v56_v8, %v58_v12 }
  0x91   :  { %v92_v15 = vmul.f32 %v90_v11, %v63_v14  ;;  %v91_v23 = vmul.f32 %v90_v11, %v62_v17 }
  0x93   :  { %v95_v20 = vrot.slane %v92_v15, 6 }
  0x95   :  { %v97_v30 = vsel %vm96_vm3, %v91_v23, %v95_v20 }
  0x96   :  { %v99_v36 = vadd.f32 %v97_v30, %v89_v29 }
  0x97   :  { %v72_v25 = vpop.permute.xlu1 %71 }
  0x98   :  { %v74_v27 = vsel %vm73_vm2, %v70_v13, %v72_v25  ;;  %v75_v28 = vsel %vm73_vm2, %v72_v25, %v70_v13 }
  0x99   :  { %v102_v31 = vmul.f32 %v100_v22, %v75_v28  ;;  %v101_v34 = vmul.f32 %v100_v22, %v74_v27 }
  0x9b   :  { %v105_v35 = vrot.slane %v102_v31, 6 }
  0x9d   :  { %v106_v37 = vsel %vm96_vm3, %v101_v34, %v105_v35 }
  0x9e   :  { %v108_v38 = vadd.f32 %v106_v37, %v99_v36 }
  0xa0   :  { %v117_v41 = vadd.f32 %v115_v39, %v108_v38 }
  0xa2   :  { %v119_v42 = vadd.f32 %v118_v40, %v117_v41 }
  0xa4   :  { %120 = vst [vmem:[#allocation8] sm:$0xf] %v119_v42 }
  0xa5   :  { %131 = dma.vmem_to_hbm [thread:$0]  %s127_s29, 64, %s129_s5, [#allocation5]  }
  0xa6   :  { %212 = dma.done.wait [#allocation5], 64  }
  0xa7   :  { %213 = vsyncadd [#allocation5], 4294967232 }
  0xa8   :  { %136 = vsyncpa [#allocation4], 1 }
  0xa9   :  { %137 = vsyncpa [#allocation5], 1 }
  0xaa   :  { %138 = vsyncpa [#allocation6], 1 }

</bundles_post_ra>
